<compile_context>
chip_gen: v6e
topology: v6e:2x2x1
jax: 0.10.0
libtpu: 0.0.40
codegen_flags: <defaults>
</compile_context>

<pallas_src>
import math
import functools

import jax
import jax.numpy as jnp
from jax import lax
from jax.experimental import pallas as pl
from jax.experimental.pallas import tpu as pltpu


# ---------------------------------------------------------------------------
# VMEM limit: ~3/4 of physical VMEM, capped at 96 MiB (v5e/v6e: 96 MiB,
# v7x (64 MiB physical): 48 MiB).
# ---------------------------------------------------------------------------
@functools.lru_cache(maxsize=1)
def _vmem_limit():
    try:
        cap = pltpu.get_tpu_info().vmem_capacity_bytes
    except Exception:
        cap = 128 * 1024 * 1024
    return min(96 * 1024 * 1024, int(cap) * 3 // 4)


def _pick_seq_tile(L, cap=256):
    """Largest multiple-of-8 divisor of L that is <= cap; else L (full dim)."""
    start = min(L, cap)
    start -= start % 8
    for t in range(start, 7, -8):
        if L % t == 0:
            return t
    return L


# ---------------------------------------------------------------------------
# Kernel 1: fused self-attention block.
# Grid = (batch, q_tile).  Per batch element, at q-tile 0 the K / V projections
# for the full sequence are computed and cached (bf16) in VMEM scratch; every
# q-tile step computes its Q projection, head-batched attention, the output
# projection (head-batched matmul + sum over heads), residual and LayerNorm1.
# ---------------------------------------------------------------------------
def _attn_kernel(src_ref, pos_ref, wq_ref, bq_ref, wk_ref, bk_ref,
                 wv_ref, bv_ref, woh_ref, bo_ref, g_ref, b_ref,
                 o_ref, k_scr, v_scr, *, nheads, tq, scale):
    qi = pl.program_id(1)
    L = src_ref.shape[1]
    E = src_ref.shape[2]
    hd = E // nheads
    cd = wq_ref.dtype            # compute dtype (bf16), weights pre-cast

    # --- K / V projections for the whole sequence, once per batch element ---
    @pl.when(qi == 0)
    def _():
        x_full = src_ref[0]                                   # (L, E) f32
        kv_in = (x_full + pos_ref[0]).astype(cd)
        k = jnp.dot(kv_in, wk_ref[...],
                    preferred_element_type=jnp.float32) + bk_ref[...]
        v = jnp.dot(x_full.astype(cd), wv_ref[...],
                    preferred_element_type=jnp.float32) + bv_ref[...]
        k_scr[...] = jnp.transpose(k.reshape(L, nheads, hd), (1, 0, 2)).astype(cd)
        v_scr[...] = jnp.transpose(v.reshape(L, nheads, hd), (1, 0, 2)).astype(cd)

    # --- Q projection for this query tile ---
    q0 = pl.multiple_of(qi * tq, tq)
    x_t = src_ref[0, pl.ds(q0, tq), :]                        # (tq, E) f32
    q_in = (x_t + pos_ref[0, pl.ds(q0, tq), :]).astype(cd)
    q = jnp.dot(q_in, wq_ref[...],
                preferred_element_type=jnp.float32) + bq_ref[...]
    q = q * scale
    q_h = jnp.transpose(q.reshape(tq, nheads, hd), (1, 0, 2)).astype(cd)

    # --- head-batched attention: (h, tq, hd) x (h, L, hd) ---
    s = jnp.einsum('hqd,hkd->hqk', q_h, k_scr[...],
                   preferred_element_type=jnp.float32)        # (h, tq, L) f32
    s = s - jnp.max(s, axis=-1, keepdims=True)
    p = jnp.exp(s)
    p = p * pl.reciprocal(jnp.sum(p, axis=-1, keepdims=True), approx=True)

    o_h = jnp.einsum('hqk,hkd->hqd', p.astype(cd), v_scr[...],
                     preferred_element_type=jnp.float32)      # (h, tq, hd)

    # --- output projection (no concat): per-head matmul then sum over heads ---
    y_h = jnp.einsum('hqd,hde->hqe', o_h.astype(cd), woh_ref[...],
                     preferred_element_type=jnp.float32)      # (h, tq, E)
    y = jnp.sum(y_h, axis=0) + bo_ref[...]                    # (tq, E)

    # --- residual (dropout1 = id) + LayerNorm1 ---
    z = x_t + y
    mean = jnp.mean(z, axis=-1, keepdims=True)
    var = jnp.mean(jnp.square(z - mean), axis=-1, keepdims=True)
    o_ref[0] = (z - mean) * lax.rsqrt(var + 1e-5) * g_ref[...] + b_ref[...]


def attention_block(x, pos, p, *, nheads, compute_dtype):
    """x, pos: (B, L, E) f32 -> (B, L, E) f32 (fused attn + residual + LN1)."""
    B, L, E = x.shape
    assert E % nheads == 0
    hd = E // nheads
    tq = _pick_seq_tile(L)
    nq = L // tq
    scale = 1.0 / math.sqrt(hd)
    cd = compute_dtype

    # Pre-cast weights to the MXU compute dtype in the wrapper (once).
    wq = p['w_q'].astype(cd)
    wk = p['w_k'].astype(cd)
    wv = p['w_v'].astype(cd)
    woh = p['w_o'].reshape(nheads, hd, E).astype(cd)

    kernel = functools.partial(_attn_kernel, nheads=nheads, tq=tq, scale=scale)

    def full2d(r, c):
        return pl.BlockSpec((r, c), lambda b, qi: (0, 0))

    return pl.pallas_call(
        kernel,
        out_shape=jax.ShapeDtypeStruct((B, L, E), jnp.float32),
        grid=(B, nq),
        in_specs=[
            pl.BlockSpec((1, L, E), lambda b, qi: (b, 0, 0)),   # src (full seq)
            pl.BlockSpec((1, L, E), lambda b, qi: (b, 0, 0)),   # pos (full seq)
            full2d(E, E), full2d(1, E),                          # w_q, b_q
            full2d(E, E), full2d(1, E),                          # w_k, b_k
            full2d(E, E), full2d(1, E),                          # w_v, b_v
            pl.BlockSpec((nheads, hd, E), lambda b, qi: (0, 0, 0)),  # w_o (heads)
            full2d(1, E),                                        # b_o
            full2d(1, E), full2d(1, E),                          # gamma1, beta1
        ],
        out_specs=pl.BlockSpec((1, tq, E), lambda b, qi: (b, qi, 0)),
        scratch_shapes=[pltpu.VMEM((nheads, L, hd), cd),         # K heads cache
                        pltpu.VMEM((nheads, L, hd), cd)],        # V heads cache
        compiler_params=pltpu.CompilerParams(
            dimension_semantics=("parallel", "arbitrary"),
            vmem_limit_bytes=_vmem_limit()),
    )(x, pos,
      wq, p['b_q'].reshape(1, E),
      wk, p['b_k'].reshape(1, E),
      wv, p['b_v'].reshape(1, E),
      woh, p['b_o'].reshape(1, E),
      p['g1'].reshape(1, E), p['be1'].reshape(1, E))


# ---------------------------------------------------------------------------
# Kernel 2: fused FFN   LayerNorm2(x + W2 relu(W1 x + b1) + b2)
# Row-tiled over M = B*L; bf16 weights stay resident per tile.
# ---------------------------------------------------------------------------
def _ffn_kernel(x_ref, w1_ref, b1_ref, w2_ref, b2_ref, g_ref, b_ref, o_ref):
    x = x_ref[...]                                    # (tm, E) f32
    cd = w1_ref.dtype                                 # weights pre-cast to bf16
    h = jnp.dot(x.astype(cd), w1_ref[...],
                preferred_element_type=jnp.float32) + b1_ref[...]
    h = jnp.maximum(h, 0.0)                           # relu (dropout = id)
    y = jnp.dot(h.astype(cd), w2_ref[...],
                preferred_element_type=jnp.float32) + b2_ref[...]
    z = x + y                                         # residual (dropout2 = id)
    mean = jnp.mean(z, axis=-1, keepdims=True)
    var = jnp.mean(jnp.square(z - mean), axis=-1, keepdims=True)
    o_ref[...] = (z - mean) * lax.rsqrt(var + 1e-5) * g_ref[...] + b_ref[...]


def ffn_block(x, p, *, compute_dtype):
    """x: (M, E) f32 -> (M, E) f32 (fused linear1+relu+linear2+residual+LN2)."""
    M, E = x.shape
    F_ = p['w1'].shape[1]
    cd = compute_dtype
    # MXU-friendly row tile; partial last tile handled by pl.cdiv grid.
    tm = M if M <= 512 else 512

    w1 = p['w1'].astype(cd)
    w2 = p['w2'].astype(cd)

    return pl.pallas_call(
        _ffn_kernel,
        out_shape=jax.ShapeDtypeStruct((M, E), jnp.float32),
        grid=(pl.cdiv(M, tm),),
        in_specs=[pl.BlockSpec((tm, E), lambda i: (i, 0)),
                  pl.BlockSpec((E, F_), lambda i: (0, 0)),
                  pl.BlockSpec((1, F_), lambda i: (0, 0)),
                  pl.BlockSpec((F_, E), lambda i: (0, 0)),
                  pl.BlockSpec((1, E), lambda i: (0, 0)),
                  pl.BlockSpec((1, E), lambda i: (0, 0)),
                  pl.BlockSpec((1, E), lambda i: (0, 0))],
        out_specs=pl.BlockSpec((tm, E), lambda i: (i, 0)),
        compiler_params=pltpu.CompilerParams(
            dimension_semantics=("parallel",),
            vmem_limit_bytes=_vmem_limit()),
    )(x, w1, p['b1'].reshape(1, F_), w2, p['b2'].reshape(1, E),
      p['g2'].reshape(1, E), p['be2'].reshape(1, E))


# ---------------------------------------------------------------------------
# Parameters (synthetic, matches TransformerEncoderLayer structure)
# ---------------------------------------------------------------------------
def init_params(key, d_model, dim_feedforward):
    ks = jax.random.split(key, 6)
    s = 0.05
    w = lambda k, shape: s * jax.random.normal(k, shape, jnp.float32)
    z = lambda n: jnp.zeros((n,), jnp.float32)
    one = lambda n: jnp.ones((n,), jnp.float32)
    return {
        # nn.MultiheadAttention: in_proj split into q/k/v and out_proj
        'w_q': w(ks[0], (d_model, d_model)), 'b_q': z(d_model),
        'w_k': w(ks[1], (d_model, d_model)), 'b_k': z(d_model),
        'w_v': w(ks[2], (d_model, d_model)), 'b_v': z(d_model),
        'w_o': w(ks[3], (d_model, d_model)), 'b_o': z(d_model),
        # norm1 (after attention), norm2 (after FFN)
        'g1': one(d_model), 'be1': z(d_model),
        'g2': one(d_model), 'be2': z(d_model),
        # FFN
        'w1': w(ks[4], (d_model, dim_feedforward)), 'b1': z(dim_feedforward),
        'w2': w(ks[5], (dim_feedforward, d_model)), 'b2': z(d_model),
    }


# ---------------------------------------------------------------------------
# Forward pass (forward_post, normalize_before=False, eval mode)
# ---------------------------------------------------------------------------
def transformer_encoder_layer(params, src, src_mask=None,
                              src_key_padding_mask=None, pos=None,
                              *, nheads, compute_dtype=jnp.bfloat16):
    """src, pos: (L, B, E) seq-first, same as the PyTorch module."""
    # TODO(synk): attn_mask / key_padding_mask not implemented (None in this path).
    assert src_mask is None and src_key_padding_mask is None
    L, B, E = src.shape
    if pos is None:
        pos = jnp.zeros_like(src)

    # TODO(synk): the (L,B,E)<->(B,L,E) layout change could be folded into the
    # BlockSpecs (squeezed middle batch dim) to save these HBM layout copies.
    x = jnp.transpose(src, (1, 0, 2))      # (B, L, E)
    p = jnp.transpose(pos, (1, 0, 2))

    # self-attn + residual + norm1 (one fused pallas_call, grid (B, q_tiles))
    x = attention_block(x, p, params, nheads=nheads, compute_dtype=compute_dtype)

    # FFN + residual + norm2 (one fused, row-tiled pallas_call)
    out = ffn_block(x.reshape(B * L, E), params, compute_dtype=compute_dtype)

    return jnp.transpose(out.reshape(B, L, E), (1, 0, 2))   # (L, B, E)


# ---------------------------------------------------------------------------
if __name__ == "__main__":
    d_model, dim_feedforward, nheads = 32, 64, 4
    B, L = 2, 8                              # batch, sequence length

    key = jax.random.PRNGKey(0)
    kp, k1, k2 = jax.random.split(key, 3)
    params = init_params(kp, d_model, dim_feedforward)

    src = jax.random.normal(k1, (L, B, d_model), jnp.float32)
    pos = 0.1 * jax.random.normal(k2, (L, B, d_model), jnp.float32)

    fwd = jax.jit(functools.partial(transformer_encoder_layer, nheads=nheads))
    out = fwd(params, src, None, None, pos)
    out = jax.block_until_ready(out)

    assert out.shape == (L, B, d_model)
    assert bool(jnp.all(jnp.isfinite(out)))
    print("KERNEL_OK")
</pallas_src>

<mosaic_0001>
module attributes {stable_mosaic.version = 11 : i64} {
  func.func @_attn_kernel(%arg0: i32, %arg1: i32, %arg2: memref<1x8x32xf32, #tpu.memory_space<vmem>>, %arg3: memref<1x8x32xf32, #tpu.memory_space<vmem>>, %arg4: memref<32x32xbf16, #tpu.memory_space<vmem>>, %arg5: memref<1x32xf32, #tpu.memory_space<vmem>>, %arg6: memref<32x32xbf16, #tpu.memory_space<vmem>>, %arg7: memref<1x32xf32, #tpu.memory_space<vmem>>, %arg8: memref<32x32xbf16, #tpu.memory_space<vmem>>, %arg9: memref<1x32xf32, #tpu.memory_space<vmem>>, %arg10: memref<4x8x32xbf16, #tpu.memory_space<vmem>>, %arg11: memref<1x32xf32, #tpu.memory_space<vmem>>, %arg12: memref<1x32xf32, #tpu.memory_space<vmem>>, %arg13: memref<1x32xf32, #tpu.memory_space<vmem>>, %arg14: memref<1x8x32xf32, #tpu.memory_space<vmem>>, %arg15: memref<4x8x8xbf16, #tpu.memory_space<vmem>>, %arg16: memref<4x8x8xbf16, #tpu.memory_space<vmem>>) attributes {dimension_semantics = [#tpu.dimension_semantics<parallel>, #tpu.dimension_semantics<arbitrary>], iteration_bounds = array<i64: 2, 1>, scalar_prefetch = 0 : i64, scratch_operands = 2 : i64, tpu.core_type = #tpu.core_type<tc>, window_params = [{transform_indices = @transform_0, window_bounds = array<i64: 1, 8, 32>}, {transform_indices = @transform_1, window_bounds = array<i64: 1, 8, 32>}, {pipeline_mode = #tpu.pipeline_mode<synchronous>, transform_indices = @transform_2, window_bounds = array<i64: 32, 32>}, {pipeline_mode = #tpu.pipeline_mode<synchronous>, transform_indices = @transform_3, window_bounds = array<i64: 1, 32>}, {pipeline_mode = #tpu.pipeline_mode<synchronous>, transform_indices = @transform_4, window_bounds = array<i64: 32, 32>}, {pipeline_mode = #tpu.pipeline_mode<synchronous>, transform_indices = @transform_5, window_bounds = array<i64: 1, 32>}, {pipeline_mode = #tpu.pipeline_mode<synchronous>, transform_indices = @transform_6, window_bounds = array<i64: 32, 32>}, {pipeline_mode = #tpu.pipeline_mode<synchronous>, transform_indices = @transform_7, window_bounds = array<i64: 1, 32>}, {pipeline_mode = #tpu.pipeline_mode<synchronous>, transform_indices = @transform_8, window_bounds = array<i64: 4, 8, 32>}, {pipeline_mode = #tpu.pipeline_mode<synchronous>, transform_indices = @transform_9, window_bounds = array<i64: 1, 32>}, {pipeline_mode = #tpu.pipeline_mode<synchronous>, transform_indices = @transform_10, window_bounds = array<i64: 1, 32>}, {pipeline_mode = #tpu.pipeline_mode<synchronous>, transform_indices = @transform_11, window_bounds = array<i64: 1, 32>}, {transform_indices = @transform_12, window_bounds = array<i64: 1, 8, 32>}]} {
    %c0_i32 = arith.constant 0 : i32
    %0 = arith.cmpi eq, %arg1, %c0_i32 : i32
    %1 = arith.extui %0 : i1 to i32
    %c0_i32_0 = arith.constant 0 : i32
    %2 = arith.cmpi ne, %1, %c0_i32_0 : i32
    scf.if %2 {
      %c0_38 = arith.constant 0 : index
      %c0_39 = arith.constant 0 : index
      %c0_40 = arith.constant 0 : index
      %73 = vector.load %arg2[%c0_38, %c0_39, %c0_40] : memref<1x8x32xf32, #tpu.memory_space<vmem>>, vector<1x8x32xf32>
      %74 = vector.shape_cast %73 : vector<1x8x32xf32> to vector<8x32xf32>
      %c0_41 = arith.constant 0 : index
      %c0_42 = arith.constant 0 : index
      %c0_43 = arith.constant 0 : index
      %75 = vector.load %arg3[%c0_41, %c0_42, %c0_43] : memref<1x8x32xf32, #tpu.memory_space<vmem>>, vector<1x8x32xf32>
      %76 = vector.shape_cast %75 : vector<1x8x32xf32> to vector<8x32xf32>
      %77 = arith.addf %74, %76 : vector<8x32xf32>
      %78 = arith.truncf %77 : vector<8x32xf32> to vector<8x32xbf16>
      %c0_44 = arith.constant 0 : index
      %c0_45 = arith.constant 0 : index
      %79 = vector.load %arg6[%c0_44, %c0_45] : memref<32x32xbf16, #tpu.memory_space<vmem>>, vector<32x32xbf16>
      %cst_46 = arith.constant dense<0.000000e+00> : vector<8x32xf32>
      %80 = tpu.matmul %78, %79, %cst_46 {dimension_numbers = #tpu.dot_dimension_numbers<[1], [0], [0], [1], [0, 0, 1, 1], [], []>} : vector<8x32xbf16>, vector<32x32xbf16>, vector<8x32xf32> -> vector<8x32xf32>
      %c0_47 = arith.constant 0 : index
      %c0_48 = arith.constant 0 : index
      %81 = vector.load %arg7[%c0_47, %c0_48] : memref<1x32xf32, #tpu.memory_space<vmem>>, vector<1x32xf32>
      %82 = vector.broadcast %81 : vector<1x32xf32> to vector<8x32xf32>
      %83 = arith.addf %80, %82 : vector<8x32xf32>
      %84 = arith.truncf %74 : vector<8x32xf32> to vector<8x32xbf16>
      %c0_49 = arith.constant 0 : index
      %c0_50 = arith.constant 0 : index
      %85 = vector.load %arg8[%c0_49, %c0_50] : memref<32x32xbf16, #tpu.memory_space<vmem>>, vector<32x32xbf16>
      %cst_51 = arith.constant dense<0.000000e+00> : vector<8x32xf32>
      %86 = tpu.matmul %84, %85, %cst_51 {dimension_numbers = #tpu.dot_dimension_numbers<[1], [0], [0], [1], [0, 0, 1, 1], [], []>} : vector<8x32xbf16>, vector<32x32xbf16>, vector<8x32xf32> -> vector<8x32xf32>
      %c0_52 = arith.constant 0 : index
      %c0_53 = arith.constant 0 : index
      %87 = vector.load %arg9[%c0_52, %c0_53] : memref<1x32xf32, #tpu.memory_space<vmem>>, vector<1x32xf32>
      %88 = vector.broadcast %87 : vector<1x32xf32> to vector<8x32xf32>
      %89 = arith.addf %86, %88 : vector<8x32xf32>
      %90 = vector.shape_cast %83 : vector<8x32xf32> to vector<8x4x8xf32>
      %91 = tpu.transpose %90, [1, 0, 2] : vector<8x4x8xf32> -> vector<4x8x8xf32>
      %92 = arith.truncf %91 : vector<4x8x8xf32> to vector<4x8x8xbf16>
      %c0_54 = arith.constant 0 : index
      %c0_55 = arith.constant 0 : index
      %c0_56 = arith.constant 0 : index
      %93 = vector.load %arg15[%c0_54, %c0_55, %c0_56] : memref<4x8x8xbf16, #tpu.memory_space<vmem>>, vector<4x8x8xbf16>
      tpu.vector_store %arg15[%c0_54, %c0_55, %c0_56], %92 {strides = array<i32>} : memref<4x8x8xbf16, #tpu.memory_space<vmem>>, vector<4x8x8xbf16>,
      %94 = vector.shape_cast %89 : vector<8x32xf32> to vector<8x4x8xf32>
      %95 = tpu.transpose %94, [1, 0, 2] : vector<8x4x8xf32> -> vector<4x8x8xf32>
      %96 = arith.truncf %95 : vector<4x8x8xf32> to vector<4x8x8xbf16>
      %c0_57 = arith.constant 0 : index
      %c0_58 = arith.constant 0 : index
      %c0_59 = arith.constant 0 : index
      %97 = vector.load %arg16[%c0_57, %c0_58, %c0_59] : memref<4x8x8xbf16, #tpu.memory_space<vmem>>, vector<4x8x8xbf16>
      tpu.vector_store %arg16[%c0_57, %c0_58, %c0_59], %96 {strides = array<i32>} : memref<4x8x8xbf16, #tpu.memory_space<vmem>>, vector<4x8x8xbf16>,
    } else {
    }
    %c8_i32 = arith.constant 8 : i32
    %3 = arith.muli %arg1, %c8_i32 : i32
    %4 = tpu.assume_multiple %3, 8 : i32
    %c0 = arith.constant 0 : index
    %5 = arith.index_cast %4 : i32 to index
    %c0_1 = arith.constant 0 : index
    %6 = vector.load %arg2[%c0, %5, %c0_1] : memref<1x8x32xf32, #tpu.memory_space<vmem>>, vector<1x8x32xf32>
    %7 = vector.shape_cast %6 : vector<1x8x32xf32> to vector<8x32xf32>
    %c0_2 = arith.constant 0 : index
    %8 = arith.index_cast %4 : i32 to index
    %c0_3 = arith.constant 0 : index
    %9 = vector.load %arg3[%c0_2, %8, %c0_3] : memref<1x8x32xf32, #tpu.memory_space<vmem>>, vector<1x8x32xf32>
    %10 = vector.shape_cast %9 : vector<1x8x32xf32> to vector<8x32xf32>
    %11 = arith.addf %7, %10 : vector<8x32xf32>
    %12 = arith.truncf %11 : vector<8x32xf32> to vector<8x32xbf16>
    %c0_4 = arith.constant 0 : index
    %c0_5 = arith.constant 0 : index
    %13 = vector.load %arg4[%c0_4, %c0_5] : memref<32x32xbf16, #tpu.memory_space<vmem>>, vector<32x32xbf16>
    %cst = arith.constant dense<0.000000e+00> : vector<8x32xf32>
    %14 = tpu.matmul %12, %13, %cst {dimension_numbers = #tpu.dot_dimension_numbers<[1], [0], [0], [1], [0, 0, 1, 1], [], []>} : vector<8x32xbf16>, vector<32x32xbf16>, vector<8x32xf32> -> vector<8x32xf32>
    %c0_6 = arith.constant 0 : index
    %c0_7 = arith.constant 0 : index
    %15 = vector.load %arg5[%c0_6, %c0_7] : memref<1x32xf32, #tpu.memory_space<vmem>>, vector<1x32xf32>
    %16 = vector.broadcast %15 : vector<1x32xf32> to vector<8x32xf32>
    %17 = arith.addf %14, %16 : vector<8x32xf32>
    %cst_8 = arith.constant 0.353553385 : f32
    %18 = vector.broadcast %cst_8 : f32 to vector<8x32xf32>
    %19 = arith.mulf %17, %18 : vector<8x32xf32>
    %20 = vector.shape_cast %19 : vector<8x32xf32> to vector<8x4x8xf32>
    %21 = tpu.transpose %20, [1, 0, 2] : vector<8x4x8xf32> -> vector<4x8x8xf32>
    %22 = arith.truncf %21 : vector<4x8x8xf32> to vector<4x8x8xbf16>
    %c0_9 = arith.constant 0 : index
    %c0_10 = arith.constant 0 : index
    %c0_11 = arith.constant 0 : index
    %23 = vector.load %arg15[%c0_9, %c0_10, %c0_11] : memref<4x8x8xbf16, #tpu.memory_space<vmem>>, vector<4x8x8xbf16>
    "tpu.trace_start"() <{level = 10 : i32, message = "hqd,hkd->hqk"}> : () -> ()
    %cst_12 = arith.constant dense<0.000000e+00> : vector<4x8x8xf32>
    %24 = tpu.matmul %22, %23, %cst_12 {dimension_numbers = #tpu.dot_dimension_numbers<[2], [2], [1], [1], [0, 0, 0, 1, 1, 1], [0], [0]>} : vector<4x8x8xbf16>, vector<4x8x8xbf16>, vector<4x8x8xf32> -> vector<4x8x8xf32>
    "tpu.trace_stop"() : () -> ()
    %cst_13 = arith.constant dense<0xFF800000> : vector<4x8xf32>
    %25 = vector.multi_reduction <maximumf>, %24, %cst_13 [2] : vector<4x8x8xf32> to vector<4x8xf32>
    %26 = vector.shape_cast %25 : vector<4x8xf32> to vector<4x8x1xf32>
    %27 = vector.broadcast %26 : vector<4x8x1xf32> to vector<4x8x8xf32>
    %28 = arith.subf %24, %27 : vector<4x8x8xf32>
    %29 = math.exp %28 : vector<4x8x8xf32>
    %cst_14 = arith.constant dense<0.000000e+00> : vector<4x8xf32>
    %30 = vector.multi_reduction <add>, %29, %cst_14 [2] : vector<4x8x8xf32> to vector<4x8xf32>
    %31 = vector.shape_cast %30 : vector<4x8xf32> to vector<4x8x1xf32>
    %32 = tpu.reciprocal %31 {approx = true} : vector<4x8x1xf32> -> vector<4x8x1xf32>
    %33 = vector.broadcast %32 : vector<4x8x1xf32> to vector<4x8x8xf32>
    %34 = arith.mulf %29, %33 : vector<4x8x8xf32>
    %35 = arith.truncf %34 : vector<4x8x8xf32> to vector<4x8x8xbf16>
    %c0_15 = arith.constant 0 : index
    %c0_16 = arith.constant 0 : index
    %c0_17 = arith.constant 0 : index
    %36 = vector.load %arg16[%c0_15, %c0_16, %c0_17] : memref<4x8x8xbf16, #tpu.memory_space<vmem>>, vector<4x8x8xbf16>
    "tpu.trace_start"() <{level = 10 : i32, message = "hqk,hkd->hqd"}> : () -> ()
    %cst_18 = arith.constant dense<0.000000e+00> : vector<4x8x8xf32>
    %37 = tpu.matmul %35, %36, %cst_18 {dimension_numbers = #tpu.dot_dimension_numbers<[2], [1], [1], [2], [0, 0, 0, 1, 1, 2], [0], [0]>} : vector<4x8x8xbf16>, vector<4x8x8xbf16>, vector<4x8x8xf32> -> vector<4x8x8xf32>
    "tpu.trace_stop"() : () -> ()
    %38 = arith.truncf %37 : vector<4x8x8xf32> to vector<4x8x8xbf16>
    %c0_19 = arith.constant 0 : index
    %c0_20 = arith.constant 0 : index
    %c0_21 = arith.constant 0 : index
    %39 = vector.load %arg10[%c0_19, %c0_20, %c0_21] : memref<4x8x32xbf16, #tpu.memory_space<vmem>>, vector<4x8x32xbf16>
    "tpu.trace_start"() <{level = 10 : i32, message = "hqd,hde->hqe"}> : () -> ()
    %cst_22 = arith.constant dense<0.000000e+00> : vector<4x8x32xf32>
    %40 = tpu.matmul %38, %39, %cst_22 {dimension_numbers = #tpu.dot_dimension_numbers<[2], [1], [1], [2], [0, 0, 0, 1, 1, 2], [0], [0]>} : vector<4x8x8xbf16>, vector<4x8x32xbf16>, vector<4x8x32xf32> -> vector<4x8x32xf32>
    "tpu.trace_stop"() : () -> ()
    %cst_23 = arith.constant dense<0.000000e+00> : vector<8x32xf32>
    %41 = vector.multi_reduction <add>, %40, %cst_23 [0] : vector<4x8x32xf32> to vector<8x32xf32>
    %c0_24 = arith.constant 0 : index
    %c0_25 = arith.constant 0 : index
    %42 = vector.load %arg11[%c0_24, %c0_25] : memref<1x32xf32, #tpu.memory_space<vmem>>, vector<1x32xf32>
    %43 = vector.broadcast %42 : vector<1x32xf32> to vector<8x32xf32>
    %44 = arith.addf %41, %43 : vector<8x32xf32>
    %45 = arith.addf %7, %44 : vector<8x32xf32>
    %cst_26 = arith.constant dense<0.000000e+00> : vector<8xf32>
    %46 = vector.multi_reduction <add>, %45, %cst_26 [1] : vector<8x32xf32> to vector<8xf32>
    %47 = vector.shape_cast %46 : vector<8xf32> to vector<8x1xf32>
    %cst_27 = arith.constant 3.200000e+01 : f32
    %48 = vector.broadcast %cst_27 : f32 to vector<8x1xf32>
    %49 = arith.divf %47, %48 : vector<8x1xf32>
    %50 = vector.broadcast %49 : vector<8x1xf32> to vector<8x32xf32>
    %51 = arith.subf %45, %50 : vector<8x32xf32>
    %52 = arith.mulf %51, %51 : vector<8x32xf32>
    %cst_28 = arith.constant dense<0.000000e+00> : vector<8xf32>
    %53 = vector.multi_reduction <add>, %52, %cst_28 [1] : vector<8x32xf32> to vector<8xf32>
    %54 = vector.shape_cast %53 : vector<8xf32> to vector<8x1xf32>
    %cst_29 = arith.constant 3.200000e+01 : f32
    %55 = vector.broadcast %cst_29 : f32 to vector<8x1xf32>
    %56 = arith.divf %54, %55 : vector<8x1xf32>
    %57 = vector.broadcast %49 : vector<8x1xf32> to vector<8x32xf32>
    %58 = arith.subf %45, %57 : vector<8x32xf32>
    %cst_30 = arith.constant 9.99999974E-6 : f32
    %59 = vector.broadcast %cst_30 : f32 to vector<8x1xf32>
    %60 = arith.addf %56, %59 : vector<8x1xf32>
    %61 = math.rsqrt %60 : vector<8x1xf32>
    %62 = vector.broadcast %61 : vector<8x1xf32> to vector<8x32xf32>
    %63 = arith.mulf %58, %62 : vector<8x32xf32>
    %c0_31 = arith.constant 0 : index
    %c0_32 = arith.constant 0 : index
    %64 = vector.load %arg12[%c0_31, %c0_32] : memref<1x32xf32, #tpu.memory_space<vmem>>, vector<1x32xf32>
    %65 = vector.broadcast %64 : vector<1x32xf32> to vector<8x32xf32>
    %66 = arith.mulf %63, %65 : vector<8x32xf32>
    %c0_33 = arith.constant 0 : index
    %c0_34 = arith.constant 0 : index
    %67 = vector.load %arg13[%c0_33, %c0_34] : memref<1x32xf32, #tpu.memory_space<vmem>>, vector<1x32xf32>
    %68 = vector.broadcast %67 : vector<1x32xf32> to vector<8x32xf32>
    %69 = arith.addf %66, %68 : vector<8x32xf32>
    %c0_35 = arith.constant 0 : index
    %c0_36 = arith.constant 0 : index
    %c0_37 = arith.constant 0 : index
    %70 = vector.load %arg14[%c0_35, %c0_36, %c0_37] : memref<1x8x32xf32, #tpu.memory_space<vmem>>, vector<1x8x32xf32>
    %71 = vector.shape_cast %70 : vector<1x8x32xf32> to vector<8x32xf32>
    %72 = vector.shape_cast %69 : vector<8x32xf32> to vector<1x8x32xf32>
    tpu.vector_store %arg14[%c0_35, %c0_36, %c0_37], %72 {strides = array<i32>} : memref<1x8x32xf32, #tpu.memory_space<vmem>>, vector<1x8x32xf32>,
    return
  }
  func.func @transform_0(%arg0: i32, %arg1: i32) -> (i32, i32, i32) {
    %c0_i32 = arith.constant 0 : i32
    %c0_i32_0 = arith.constant 0 : i32
    %c0_i32_1 = arith.constant 0 : i32
    return %arg0, %c0_i32, %c0_i32_0 : i32, i32, i32
  }
  func.func @transform_1(%arg0: i32, %arg1: i32) -> (i32, i32, i32) {
    %c0_i32 = arith.constant 0 : i32
    %c0_i32_0 = arith.constant 0 : i32
    %c0_i32_1 = arith.constant 0 : i32
    return %arg0, %c0_i32, %c0_i32_0 : i32, i32, i32
  }
  func.func @transform_2(%arg0: i32, %arg1: i32) -> (i32, i32) {
    %c0_i32 = arith.constant 0 : i32
    %c0_i32_0 = arith.constant 0 : i32
    %c0_i32_1 = arith.constant 0 : i32
    return %c0_i32, %c0_i32_0 : i32, i32
  }
  func.func @transform_3(%arg0: i32, %arg1: i32) -> (i32, i32) {
    %c0_i32 = arith.constant 0 : i32
    %c0_i32_0 = arith.constant 0 : i32
    %c0_i32_1 = arith.constant 0 : i32
    return %c0_i32, %c0_i32_0 : i32, i32
  }
  func.func @transform_4(%arg0: i32, %arg1: i32) -> (i32, i32) {
    %c0_i32 = arith.constant 0 : i32
    %c0_i32_0 = arith.constant 0 : i32
    %c0_i32_1 = arith.constant 0 : i32
    return %c0_i32, %c0_i32_0 : i32, i32
  }
  func.func @transform_5(%arg0: i32, %arg1: i32) -> (i32, i32) {
    %c0_i32 = arith.constant 0 : i32
    %c0_i32_0 = arith.constant 0 : i32
    %c0_i32_1 = arith.constant 0 : i32
    return %c0_i32, %c0_i32_0 : i32, i32
  }
  func.func @transform_6(%arg0: i32, %arg1: i32) -> (i32, i32) {
    %c0_i32 = arith.constant 0 : i32
    %c0_i32_0 = arith.constant 0 : i32
    %c0_i32_1 = arith.constant 0 : i32
    return %c0_i32, %c0_i32_0 : i32, i32
  }
  func.func @transform_7(%arg0: i32, %arg1: i32) -> (i32, i32) {
    %c0_i32 = arith.constant 0 : i32
    %c0_i32_0 = arith.constant 0 : i32
    %c0_i32_1 = arith.constant 0 : i32
    return %c0_i32, %c0_i32_0 : i32, i32
  }
  func.func @transform_8(%arg0: i32, %arg1: i32) -> (i32, i32, i32) {
    %c0_i32 = arith.constant 0 : i32
    %c0_i32_0 = arith.constant 0 : i32
    %c0_i32_1 = arith.constant 0 : i32
    %c0_i32_2 = arith.constant 0 : i32
    return %c0_i32, %c0_i32_0, %c0_i32_1 : i32, i32, i32
  }
  func.func @transform_9(%arg0: i32, %arg1: i32) -> (i32, i32) {
    %c0_i32 = arith.constant 0 : i32
    %c0_i32_0 = arith.constant 0 : i32
    %c0_i32_1 = arith.constant 0 : i32
    return %c0_i32, %c0_i32_0 : i32, i32
  }
  func.func @transform_10(%arg0: i32, %arg1: i32) -> (i32, i32) {
    %c0_i32 = arith.constant 0 : i32
    %c0_i32_0 = arith.constant 0 : i32
    %c0_i32_1 = arith.constant 0 : i32
    return %c0_i32, %c0_i32_0 : i32, i32
  }
  func.func @transform_11(%arg0: i32, %arg1: i32) -> (i32, i32) {
    %c0_i32 = arith.constant 0 : i32
    %c0_i32_0 = arith.constant 0 : i32
    %c0_i32_1 = arith.constant 0 : i32
    return %c0_i32, %c0_i32_0 : i32, i32
  }
  func.func @transform_12(%arg0: i32, %arg1: i32) -> (i32, i32, i32) {
    %c0_i32 = arith.constant 0 : i32
    %c0_i32_0 = arith.constant 0 : i32
    return %arg0, %arg1, %c0_i32 : i32, i32, i32
  }
}

module attributes {stable_mosaic.version = 11 : i64} {
  func.func @_ffn_kernel(%arg0: i32, %arg1: memref<16x32xf32, #tpu.memory_space<vmem>>, %arg2: memref<32x64xbf16, #tpu.memory_space<vmem>>, %arg3: memref<1x64xf32, #tpu.memory_space<vmem>>, %arg4: memref<64x32xbf16, #tpu.memory_space<vmem>>, %arg5: memref<1x32xf32, #tpu.memory_space<vmem>>, %arg6: memref<1x32xf32, #tpu.memory_space<vmem>>, %arg7: memref<1x32xf32, #tpu.memory_space<vmem>>, %arg8: memref<16x32xf32, #tpu.memory_space<vmem>>) attributes {dimension_semantics = [#tpu.dimension_semantics<parallel>], iteration_bounds = array<i64: 1>, scalar_prefetch = 0 : i64, scratch_operands = 0 : i64, tpu.core_type = #tpu.core_type<tc>, window_params = [{transform_indices = @transform_0, window_bounds = array<i64: 16, 32>}, {pipeline_mode = #tpu.pipeline_mode<synchronous>, transform_indices = @transform_1, window_bounds = array<i64: 32, 64>}, {pipeline_mode = #tpu.pipeline_mode<synchronous>, transform_indices = @transform_2, window_bounds = array<i64: 1, 64>}, {pipeline_mode = #tpu.pipeline_mode<synchronous>, transform_indices = @transform_3, window_bounds = array<i64: 64, 32>}, {pipeline_mode = #tpu.pipeline_mode<synchronous>, transform_indices = @transform_4, window_bounds = array<i64: 1, 32>}, {pipeline_mode = #tpu.pipeline_mode<synchronous>, transform_indices = @transform_5, window_bounds = array<i64: 1, 32>}, {pipeline_mode = #tpu.pipeline_mode<synchronous>, transform_indices = @transform_6, window_bounds = array<i64: 1, 32>}, {transform_indices = @transform_7, window_bounds = array<i64: 16, 32>}]} {
    %c0 = arith.constant 0 : index
    %c0_0 = arith.constant 0 : index
    %0 = vector.load %arg1[%c0, %c0_0] : memref<16x32xf32, #tpu.memory_space<vmem>>, vector<16x32xf32>
    %1 = arith.truncf %0 : vector<16x32xf32> to vector<16x32xbf16>
    %c0_1 = arith.constant 0 : index
    %c0_2 = arith.constant 0 : index
    %2 = vector.load %arg2[%c0_1, %c0_2] : memref<32x64xbf16, #tpu.memory_space<vmem>>, vector<32x64xbf16>
    %cst = arith.constant dense<0.000000e+00> : vector<16x64xf32>
    %3 = tpu.matmul %1, %2, %cst {dimension_numbers = #tpu.dot_dimension_numbers<[1], [0], [0], [1], [0, 0, 1, 1], [], []>} : vector<16x32xbf16>, vector<32x64xbf16>, vector<16x64xf32> -> vector<16x64xf32>
    %c0_3 = arith.constant 0 : index
    %c0_4 = arith.constant 0 : index
    %4 = vector.load %arg3[%c0_3, %c0_4] : memref<1x64xf32, #tpu.memory_space<vmem>>, vector<1x64xf32>
    %5 = vector.broadcast %4 : vector<1x64xf32> to vector<16x64xf32>
    %6 = arith.addf %3, %5 : vector<16x64xf32>
    %cst_5 = arith.constant 0.000000e+00 : f32
    %7 = vector.broadcast %cst_5 : f32 to vector<16x64xf32>
    %8 = arith.maximumf %6, %7 : vector<16x64xf32>
    %9 = arith.truncf %8 : vector<16x64xf32> to vector<16x64xbf16>
    %c0_6 = arith.constant 0 : index
    %c0_7 = arith.constant 0 : index
    %10 = vector.load %arg4[%c0_6, %c0_7] : memref<64x32xbf16, #tpu.memory_space<vmem>>, vector<64x32xbf16>
    %cst_8 = arith.constant dense<0.000000e+00> : vector<16x32xf32>
    %11 = tpu.matmul %9, %10, %cst_8 {dimension_numbers = #tpu.dot_dimension_numbers<[1], [0], [0], [1], [0, 0, 1, 1], [], []>} : vector<16x64xbf16>, vector<64x32xbf16>, vector<16x32xf32> -> vector<16x32xf32>
    %c0_9 = arith.constant 0 : index
    %c0_10 = arith.constant 0 : index
    %12 = vector.load %arg5[%c0_9, %c0_10] : memref<1x32xf32, #tpu.memory_space<vmem>>, vector<1x32xf32>
    %13 = vector.broadcast %12 : vector<1x32xf32> to vector<16x32xf32>
    %14 = arith.addf %11, %13 : vector<16x32xf32>
    %15 = arith.addf %0, %14 : vector<16x32xf32>
    %cst_11 = arith.constant dense<0.000000e+00> : vector<16xf32>
    %16 = vector.multi_reduction <add>, %15, %cst_11 [1] : vector<16x32xf32> to vector<16xf32>
    %17 = vector.shape_cast %16 : vector<16xf32> to vector<16x1xf32>
    %cst_12 = arith.constant 3.200000e+01 : f32
    %18 = vector.broadcast %cst_12 : f32 to vector<16x1xf32>
    %19 = arith.divf %17, %18 : vector<16x1xf32>
    %20 = vector.broadcast %19 : vector<16x1xf32> to vector<16x32xf32>
    %21 = arith.subf %15, %20 : vector<16x32xf32>
    %22 = arith.mulf %21, %21 : vector<16x32xf32>
    %cst_13 = arith.constant dense<0.000000e+00> : vector<16xf32>
    %23 = vector.multi_reduction <add>, %22, %cst_13 [1] : vector<16x32xf32> to vector<16xf32>
    %24 = vector.shape_cast %23 : vector<16xf32> to vector<16x1xf32>
    %cst_14 = arith.constant 3.200000e+01 : f32
    %25 = vector.broadcast %cst_14 : f32 to vector<16x1xf32>
    %26 = arith.divf %24, %25 : vector<16x1xf32>
    %27 = vector.broadcast %19 : vector<16x1xf32> to vector<16x32xf32>
    %28 = arith.subf %15, %27 : vector<16x32xf32>
    %cst_15 = arith.constant 9.99999974E-6 : f32
    %29 = vector.broadcast %cst_15 : f32 to vector<16x1xf32>
    %30 = arith.addf %26, %29 : vector<16x1xf32>
    %31 = math.rsqrt %30 : vector<16x1xf32>
    %32 = vector.broadcast %31 : vector<16x1xf32> to vector<16x32xf32>
    %33 = arith.mulf %28, %32 : vector<16x32xf32>
    %c0_16 = arith.constant 0 : index
    %c0_17 = arith.constant 0 : index
    %34 = vector.load %arg6[%c0_16, %c0_17] : memref<1x32xf32, #tpu.memory_space<vmem>>, vector<1x32xf32>
    %35 = vector.broadcast %34 : vector<1x32xf32> to vector<16x32xf32>
    %36 = arith.mulf %33, %35 : vector<16x32xf32>
    %c0_18 = arith.constant 0 : index
    %c0_19 = arith.constant 0 : index
    %37 = vector.load %arg7[%c0_18, %c0_19] : memref<1x32xf32, #tpu.memory_space<vmem>>, vector<1x32xf32>
    %38 = vector.broadcast %37 : vector<1x32xf32> to vector<16x32xf32>
    %39 = arith.addf %36, %38 : vector<16x32xf32>
    %c0_20 = arith.constant 0 : index
    %c0_21 = arith.constant 0 : index
    %40 = vector.load %arg8[%c0_20, %c0_21] : memref<16x32xf32, #tpu.memory_space<vmem>>, vector<16x32xf32>
    tpu.vector_store %arg8[%c0_20, %c0_21], %39 {strides = array<i32>} : memref<16x32xf32, #tpu.memory_space<vmem>>, vector<16x32xf32>,
    return
  }
  func.func @transform_0(%arg0: i32) -> (i32, i32) {
    %c0_i32 = arith.constant 0 : i32
    %c0_i32_0 = arith.constant 0 : i32
    return %arg0, %c0_i32 : i32, i32
  }
  func.func @transform_1(%arg0: i32) -> (i32, i32) {
    %c0_i32 = arith.constant 0 : i32
    %c0_i32_0 = arith.constant 0 : i32
    %c0_i32_1 = arith.constant 0 : i32
    return %c0_i32, %c0_i32_0 : i32, i32
  }
  func.func @transform_2(%arg0: i32) -> (i32, i32) {
    %c0_i32 = arith.constant 0 : i32
    %c0_i32_0 = arith.constant 0 : i32
    %c0_i32_1 = arith.constant 0 : i32
    return %c0_i32, %c0_i32_0 : i32, i32
  }
  func.func @transform_3(%arg0: i32) -> (i32, i32) {
    %c0_i32 = arith.constant 0 : i32
    %c0_i32_0 = arith.constant 0 : i32
    %c0_i32_1 = arith.constant 0 : i32
    return %c0_i32, %c0_i32_0 : i32, i32
  }
  func.func @transform_4(%arg0: i32) -> (i32, i32) {
    %c0_i32 = arith.constant 0 : i32
    %c0_i32_0 = arith.constant 0 : i32
    %c0_i32_1 = arith.constant 0 : i32
    return %c0_i32, %c0_i32_0 : i32, i32
  }
  func.func @transform_5(%arg0: i32) -> (i32, i32) {
    %c0_i32 = arith.constant 0 : i32
    %c0_i32_0 = arith.constant 0 : i32
    %c0_i32_1 = arith.constant 0 : i32
    return %c0_i32, %c0_i32_0 : i32, i32
  }
  func.func @transform_6(%arg0: i32) -> (i32, i32) {
    %c0_i32 = arith.constant 0 : i32
    %c0_i32_0 = arith.constant 0 : i32
    %c0_i32_1 = arith.constant 0 : i32
    return %c0_i32, %c0_i32_0 : i32, i32
  }
  func.func @transform_7(%arg0: i32) -> (i32, i32) {
    %c0_i32 = arith.constant 0 : i32
    %c0_i32_0 = arith.constant 0 : i32
    return %arg0, %c0_i32 : i32, i32
  }
}

</mosaic_0001>

<bundles_post_ra>
// kernel: transformer_encoder_layer.3
= control target key start
LH: loop header
LB: loop body
LE: loop exit
PB: predicated region body
PF: predicated region fallthrough
CT: control target
= control target key end

     0   :  { %v290_v0 = vmov 0.0   ;;  %vm291_vm0 = vmmov 0   ;;  %vm53_vm1 = vcmask 261120   ;;  %vm140_vm2 = vcmask 523264   ;;  %s381_s1 = inlined_call_operand.vmem [shape: bf16[32,64], index: 1, kind: input, shape index: {}]   ;;  %s382_s0 = inlined_call_operand.vmem [shape: f32[16,32], index: 0, kind: input, shape index: {}]   ;;  %s383_s3 = inlined_call_operand.vmem [shape: bf16[64,32], index: 3, kind: input, shape index: {}]   ;;  %s384_s2 = inlined_call_operand.vmem [shape: f32[1,64], index: 2, kind: input, shape index: {}]   ;;  %s385_s4 = inlined_call_operand.vmem [shape: f32[1,32], index: 4, kind: input, shape index: {}]   ;;  %s386_s5 = inlined_call_operand.vmem [shape: f32[1,32], index: 5, kind: input, shape index: {}]   ;;  %s387_s6 = inlined_call_operand.vmem [shape: f32[1,32], index: 6, kind: input, shape index: {}]   ;;  %s388_s7 = inlined_call_operand.vmem [shape: f32[16,32], index: 7, kind: output, shape index: {}]  }
   0x1   :  { %258 = vmatprep.subr.bf16.mxu0 %v290_v0  ;;  %v280_v1 = vld [vmem:[%s381_s1 + $0x8] sm:$0xff]   ;;  %262 = vmatprep.mubr.msk.bf16.mxu0 %vm291_vm0, %v290_v0  ;;  %v281_v2 = vld [vmem:[%s381_s1] sm:$0xff]   ;;  %v282_v5 = vld [vmem:[%s383_s3 + $0x18] sm:$0xff]  }
   0x2   :  { %266 = vmatprep.subr.bf16.mxu1 %v290_v0  ;;  %274 = vmatprep.mubr.msk.bf16.mxu1 %vm291_vm0, %v290_v0  ;;  %v27_v3 = vld [vmem:[%s382_s0] sm:$0xff]  ;;  %v28_v4 = vld [vmem:[%s382_s0 + $0x8] sm:$0xff]  ;;  %v283_v7 = vld [vmem:[%s383_s3 + $0x10] sm:$0xff]  }
   0x3   :  { %259 = vmatpush3.bf16.msra.mxu0 %v280_v1  ;;  %v29_v6 = vpack.c.bf16 %v28_v4, %v27_v3  ;;  %267 = vmatpush3.bf16.msra.mxu1 %v282_v5  ;;  %v284_v8 = vld [vmem:[%s383_s3 + $0x8] sm:$0xff]   ;;  %v285_v9 = vld [vmem:[%s383_s3] sm:$0xff]  }
   0x4   :  { %260 = vmatprep.subr.bf16.mxu0 %v290_v0  ;;  %268 = vmatprep.subr.bf16.mxu1 %v290_v0  ;;  %v238_v10 = vld [vmem:[%s384_s2] ss:$0 sm:$0xff] }
   0x5   :  { %v242_v20 = vld [vmem:[%s385_s4] ss:$0 sm:$0xff] }
   0x6   :  { %v248_v48 = vld [vmem:[%s386_s5] ss:$0 sm:$0xff] }
   0x7   :  { %261 = vmatpush3.bf16.msra.mxu0 %v281_v2  ;;  %269 = vmatpush3.bf16.msra.mxu1 %v283_v7  ;;  %v249_v50 = vld [vmem:[%s387_s6] ss:$0 sm:$0xff] }
   0x8   :  { %270 = vmatprep.subr.bf16.mxu1 %v290_v0 }
   0xa   :  { %263 = vmatmul.mubr.msk.bf16.vlgmr.msra.gmra.mxu0 %vm53_vm1, %v29_v6 }
   0xb   :  { %271 = vmatpush3.bf16.msra.mxu1 %v284_v8 }
   0xc   :  { %272 = vmatprep.subr.bf16.mxu1 %v290_v0 }
   0xf   :  { %273 = vmatpush3.bf16.msra.mxu1 %v285_v9 }
  0xca   :  { %v91_v11 = vpop.f32.mrf.mxu0 }
  0xcb   :  { %v92_v13 = vadd.f32 %v238_v10, %v91_v11 }
  0xcc   :  { %v264_v12 = vpop.f32.mrf.mxu0 }
  0xcd   :  { %v98_v17 = vmax.f32 %v92_v13, 0.0 }
  0xce   :  { %v94_v14 = vpop.f32.mrf.mxu0 }
  0xcf   :  { %v95_v15 = vadd.f32 %v238_v10, %v94_v14 }
  0xd0   :  { %v265_v16 = vpop.f32.mrf.mxu0 }
  0xd1   :  { %v99_v18 = vmax.f32 %v95_v15, 0.0 }
  0xd3   :  { %v100_v19 = vpack.c.bf16 %v99_v18, %v98_v17 }
  0xd5   :  { %275 = vmatmul.mubr.msk.bf16.vlgmr.msra.gmra.mxu1 %vm140_vm2, %v100_v19 }
 0x195   :  { %v178_v21 = vpop.f32.mrf.mxu1 }
 0x196   :  { %v179_v22 = vadd.f32 %v242_v20, %v178_v21 }
 0x197   :  { %v276_v23 = vpop.f32.mrf.mxu1 }
 0x198   :  { %v185_v24 = vadd.f32 %v179_v22, %v27_v3 }
 0x199   :  { %v181_v25 = vpop.f32.mrf.mxu1 }
 0x19a   :  { %v182_v26 = vadd.f32 %v242_v20, %v181_v25  ;;  %v187_v27 = vsel %vm53_vm1, %v185_v24, 0.0 }
 0x19b   :  { %188 = vadd.xlane.f32.xlu0 %v187_v27  ;;  %v277_v28 = vpop.f32.mrf.mxu1 }
 0x19c   :  { %v186_v29 = vadd.f32 %v182_v26, %v28_v4 }
 0x19e   :  { %v190_v30 = vsel %vm53_vm1, %v186_v29, 0.0 }
 0x19f   :  { %191 = vadd.xlane.f32.xlu0 %v190_v30 }
 0x224   :  { %v189_v31 = vpop.xlane.xlu0 %188 }
 0x225   :  { %v194_v32 = vmul.f32 0.03125, %v189_v31 }
 0x227   :  { %v196_v33 = vsub.f32 %v185_v24, %v194_v32 }
 0x228   :  { %v192_v34 = vpop.xlane.xlu0 %191 }
 0x229   :  { %v195_v35 = vmul.f32 0.03125, %v192_v34  ;;  %v198_v36 = vmul.f32 %v196_v33, %v196_v33 }
 0x22b   :  { %v197_v37 = vsub.f32 %v186_v29, %v195_v35  ;;  %v200_v38 = vsel %vm53_vm1, %v198_v36, 0.0 }
 0x22c   :  { %201 = vadd.xlane.f32.xlu1 %v200_v38 }
 0x22d   :  { %v199_v39 = vmul.f32 %v197_v37, %v197_v37 }
 0x22f   :  { %v203_v40 = vsel %vm53_vm1, %v199_v39, 0.0 }
 0x230   :  { %204 = vadd.xlane.f32.xlu1 %v203_v40 }
 0x2b5   :  { %v202_v41 = vpop.xlane.xlu1 %201 }
 0x2b6   :  { %v206_v42 = vmul.f32 0.03125, %v202_v41 }
 0x2b8   :  { %v208_v43 = vadd.f32 1e-05, %v206_v42 }
 0x2b9   :  { %v205_v44 = vpop.xlane.xlu1 %204 }
 0x2ba   :  { %286 = vrsqrt.f32 %v208_v43  ;;  %v207_v45 = vmul.f32 0.03125, %v205_v44 }
 0x2bc   :  { %v209_v46 = vadd.f32 1e-05, %v207_v45 }
 0x2be   :  { %288 = vrsqrt.f32 %v209_v46 }
 0x2c7   :  { %v287_v47 = vpop.eup %286 }
 0x2c8   :  { %v212_v49 = vmul.f32 %v287_v47, %v196_v33 }
 0x2ca   :  { %v221_v51 = vmul.f32 %v248_v48, %v212_v49 }
 0x2cb   :  { %v289_v52 = vpop.eup %288 }
 0x2cc   :  { %v230_v53 = vadd.f32 %v249_v50, %v221_v51  ;;  %v213_v54 = vmul.f32 %v289_v52, %v197_v37 }
 0x2ce   :  { %232 = vst.msk [vmem:[%s388_s7] sm:$0xff] %vm53_vm1, %v230_v53  ;;  %v222_v55 = vmul.f32 %v248_v48, %v213_v54 }
 0x2d0   :  { %v231_v56 = vadd.f32 %v249_v50, %v222_v55 }
 0x2d2   :  { %233 = vst.msk [vmem:[%s388_s7 + $0x8] sm:$0xff] %vm53_vm1, %v231_v56 }

// kernel: transformer_encoder_layer.2
= control target key start
LH: loop header
LB: loop body
LE: loop exit
PB: predicated region body
PF: predicated region fallthrough
CT: control target
= control target key end

     0   :  { %s2198_s21 = smov 0   ;;  %s2200_s22 = smov 0   ;;  %s2471_s0 = inlined_call_operand.vmem [shape: f32[2,8,32], index: 0, kind: input, shape index: {}]   ;;  %s2472_s1 = inlined_call_operand.vmem [shape: f32[2,8,32], index: 1, kind: input, shape index: {}]   ;;  %s2473_s2 = inlined_call_operand.vmem [shape: bf16[32,32], index: 2, kind: input, shape index: {}]   ;;  %s2474_s3 = inlined_call_operand.vmem [shape: f32[1,32], index: 3, kind: input, shape index: {}]   ;;  %s2475_s4 = inlined_call_operand.vmem [shape: bf16[32,32], index: 4, kind: input, shape index: {}]   ;;  %s2476_s5 = inlined_call_operand.vmem [shape: f32[1,32], index: 5, kind: input, shape index: {}]   ;;  %s2477_s6 = inlined_call_operand.vmem [shape: bf16[32,32], index: 6, kind: input, shape index: {}]   ;;  %s2478_s7 = inlined_call_operand.vmem [shape: f32[1,32], index: 7, kind: input, shape index: {}]   ;;  %s2479_s8 = inlined_call_operand.vmem [shape: bf16[4,8,32], index: 8, kind: input, shape index: {}]   ;;  %s2480_s9 = inlined_call_operand.vmem [shape: f32[1,32], index: 9, kind: input, shape index: {}]   ;;  %s2481_s10 = inlined_call_operand.vmem [shape: f32[1,32], index: 10, kind: input, shape index: {}]   ;;  %s2482_s11 = inlined_call_operand.vmem [shape: f32[1,32], index: 11, kind: input, shape index: {}]   ;;  %s2483_s12 = inlined_call_operand.vmem [shape: f32[2,8,32], index: 12, kind: output, shape index: {}]  }
   0x1   :  { %s2202_s23 = smov 0  }
   0x2 LB: > { %s34_s24 = sadd.s32 1, %s2120_s22  ;;  %p1879_p0 = scmp.ge.s32.totalorder %s2124_s23, 1  ;;  %s2124_s23 = sphi %s2202_s23, %s22_s23   ;;  %s2120_s22 = sphi %s2200_s22, %s2485_s22   ;;  %s2116_s21 = sphi %s2198_s21, %s2484_s21  }
   0x3   : > { %p36_p1 = scmp.ge.s32.totalorder %s34_s24, 2  ;;  %p384_p2 = scmp.lt.s32.totalorder %s2124_s23, 3 }
   0x5   : > { %s2487_s24 = smov (%p36_p1, %s34_s24), 0  ;;  %p385_p3 = pnand %p1879_p0, %p384_p2 }
   0x6   : > { %p431_p4 = scmp.lt.s32.totalorder (!%p385_p3), %s2116_s21, 1  ;;  %s2128_s27 = smov (!%p385_p3), 104  }
   0x7   : > { %388 = sbr.rel (%p385_p3) target bundleno = 1595 (0x63b), region = 68  ;;  %s2129_s28 = smov (!%p385_p3), 120  }
   0xc   : > { %v2078_v0 = vld [vmem:[%s2475_s4 + $0x8] sm:$0xff]   ;;  %v2126_v1 = vmov 0.0   ;;  %v2079_v2 = vld [vmem:[%s2475_s4] sm:$0xff]   ;;  %vm2127_vm0 = vmmov 0   ;;  %s2489_s21 = smov (!%p431_p4, %s2116_s21), 1  ;;  %vm478_vm1 = vcmask 261120   ;;  %v604_v27 = vlaneseq }
   0xd   : > { %1951 = vmatprep.subr.bf16.mxu0 %v2126_v1  ;;  %1959 = vmatprep.subr.bf16.mxu1 %v2126_v1  ;;  %s2229_s29 = sshll.u32 %s2489_s21, 3  ;;  %v2080_v6 = vld [vmem:[%s2473_s2 + $0x8] sm:$0xff]   ;;  %v2081_v8 = vld [vmem:[%s2473_s2] sm:$0xff]   ;;  %v2131_v25 = vmov 1983009808   ;;  %vm739_vm2 = vcmask 60416  }
   0xe   : > { %1952 = vmatpush3.bf16.msra.mxu0 %v2078_v0  ;;  %1955 = vmatprep.mubr.msk.bf16.mxu0 %vm2127_vm0, %v2126_v1  ;;  %s434_s14 = scalar_lea.vmem %s2471_s0, %s2229_s29  ;;  %s438_s17 = scalar_lea.vmem %s2472_s1, %s2229_s29  ;;  %v1883_v9 = vld [vmem:[%s2476_s5] ss:$0 sm:$0xff]  ;;  %v2082_v17 = vld [vmem:[%s2477_s6 + $0x8] sm:$0xff]   ;;  %v602_v26 = vunpack.c.l.s4 %v2131_v25  ;;  %v2132_v28 = vmov 1934713408   ;;  %v605_v31 = vshrl.u32 %v604_v27, 7 }
   0xf   : > { %1953 = vmatprep.subr.bf16.mxu0 %v2126_v1  ;;  %1963 = vmatprep.mubr.msk.bf16.mxu1 %vm2127_vm0, %v2126_v1  ;;  %v2240_v3 = vld [vmem:[%s434_s14] sm:$0xff]  ;;  %s2130_s14 = smov 112   ;;  %v634_v29 = vunpack.c.l.s4 %v2132_v28  ;;  %vm1127_vm3 = vcmask 64512   ;;  %vm1367_vm4 = vcmask 1043456   ;;  %s445_s26 = scalar_lea.vmem %s2483_s12, %s2229_s29 }
  0x10   : > { %v452_v4 = vld [vmem:[%s438_s17] sm:$0xff]  ;;  %1960 = vmatpush3.bf16.msra.mxu1 %v2082_v17  ;;  %v522_v24 = vpack.c.bf16 %v2240_v3, %v2240_v3  ;;  %v603_v30 = vunpack.c.0.s8 %v602_v26 }
  0x11   : > { %v453_v5 = vadd.f32 %v452_v4, %v2240_v3  ;;  %v1895_v15 = vld [vmem:[%s2474_s3] ss:$0 sm:$0xff]  ;;  %1961 = vmatprep.subr.bf16.mxu1 %v2126_v1  ;;  %v635_v34 = vunpack.c.0.s8 %v634_v29 }
  0x12   : > { %1954 = vmatpush3.bf16.msra.mxu0 %v2079_v2  ;;  %v2083_v22 = vld [vmem:[%s2477_s6] sm:$0xff]   ;;  %v2287_v35 = vsub.s32 %v603_v30, %v605_v31 }
  0x13   : > { %1967 = vmatprep.subr.bf16.mxu0 %v2126_v1  ;;  %v454_v7 = vpack.c.bf16 %v453_v5, %v453_v5  ;;  %v2289_v41 = vsub.s32 %v635_v34, %v605_v31 }
  0x14   : > { %1962 = vmatpush3.bf16.msra.mxu1 %v2083_v22 }
  0x15   : > { %1956 = vmatmul.mubr.msk.bf16.vlgmr.msra.gmra.mxu0 %vm478_vm1, %v454_v7  ;;  %1975 = vmatprep.subr.bf16.mxu1 %v2126_v1 }
  0x16   : > { %1968 = vmatpush3.bf16.msra.mxu0 %v2080_v6  ;;  %1971 = vmatprep.mubr.msk.bf16.mxu0 %vm2127_vm0, %v2126_v1 }
  0x17   : > { %1969 = vmatprep.subr.bf16.mxu0 %v2126_v1  ;;  %1964 = vmatmul.mubr.msk.bf16.vlgmr.msra.gmra.mxu1 %vm478_vm1, %v522_v24 }
  0x18   : > { %1977 = vmatprep.mubr.msk.bf16.mxu1 %vm2127_vm0, %v2126_v1 }
  0x1a   : > { %1970 = vmatpush3.bf16.msra.mxu0 %v2081_v8 }
  0x1b   : > { %1981 = vmatprep.subr.bf16.mxu0 %v2126_v1 }
  0x1d   : > { %1972 = vmatmul.mubr.msk.bf16.vlgmr.msra.gmra.mxu0 %vm478_vm1, %v454_v7 }
  0x1e   : > { %1983 = vmatprep.mubr.msk.bf16.mxu0 %vm2127_vm0, %v2126_v1 }
  0xd5   : > { %v516_v10 = vpop.f32.mrf.mxu0 }
  0xd6   : > { %v517_v11 = vadd.f32 %v1883_v9, %v516_v10 }
  0xd7   : > { %v1957_v12 = vpop.f32.mrf.mxu0 }
  0xd8   : > { %596 = vrot.lane.b32.xlu1 %v517_v11, %s2128_s27  ;;  %590 = vrot.lane.b32.xlu0 %v517_v11, %s2129_s28 }
  0xd9   : > { %v519_v13 = vpop.f32.mrf.mxu0 }
  0xdb   : > { %v1958_v14 = vpop.f32.mrf.mxu0 }
  0xdc   : > { %593 = vrot.lane.b32.xlu0 %v517_v11, %s2130_s14 }
  0xdd   : > { %v966_v16 = vpop.f32.mrf.mxu0 }
  0xde   : > { %v967_v18 = vadd.f32 %v1895_v15, %v966_v16 }
  0xdf   : > { %v1973_v19 = vpop.f32.mrf.mxu0 }
  0xe0   : > { %v2269_v20 = vmul.f32 0.35355338, %v967_v18 }
  0xe1   : > { %v969_v21 = vpop.f32.mrf.mxu0 }
  0xe2   : > { %977 = vrot.lane.b32.xlu0 %v2269_v20, %s2130_s14  ;;  %974 = vrot.lane.b32.xlu1 %v2269_v20, %s2129_s28 }
  0xe3   : > { %v1974_v23 = vpop.f32.mrf.mxu0 }
  0xe6   : > { %980 = vrot.lane.b32.xlu1 %v2269_v20, %s2128_s27 }
 0x14a   : > { %v597_v32 = vpop.permute.xlu1 %596  ;;  %v591_v33 = vpop.permute.xlu0 %590 }
 0x14b   : > { %v615_v36 = vcombine.low %v591_v33, %v597_v32  ;;  %v616_v37 = vcombine.high %v591_v33, %v597_v32 }
 0x14d   : > { %v623_v42 = vrot.slane %v615_v36, %v2287_v35  ;;  %v630_v43 = vrot.slane %v616_v37, %v2287_v35 }
 0x14e   : > { %v594_v38 = vpop.permute.xlu0 %593 }
 0x14f   : > { %v599_v39 = vcombine.low %v517_v11, %v594_v38  ;;  %v600_v40 = vcombine.high %v517_v11, %v594_v38 }
 0x151   : > { %v607_v44 = vrot.slane %v599_v39, %v2287_v35  ;;  %v614_v45 = vrot.slane %v600_v40, %v2287_v35 }
 0x153   : > { %v631_v46 = vcombine.low %v607_v44, %v623_v42  ;;  %v632_v47 = vcombine.high %v607_v44, %v623_v42  ;;  %v647_v48 = vcombine.low %v614_v45, %v630_v43  ;;  %v648_v49 = vcombine.high %v614_v45, %v630_v43 }
 0x154   : > { %v975_v50 = vpop.permute.xlu1 %974  ;;  %v978_v55 = vpop.permute.xlu0 %977 }
 0x155   : > { %v639_v51 = vrot.slane %v631_v46, %v2289_v41  ;;  %v646_v52 = vrot.slane %v632_v47, %v2289_v41  ;;  %v655_v53 = vrot.slane %v647_v48, %v2289_v41  ;;  %v662_v54 = vrot.slane %v648_v49, %v2289_v41 }
 0x156   : > { %v983_v60 = vcombine.low %v2269_v20, %v978_v55  ;;  %v984_v61 = vcombine.high %v2269_v20, %v978_v55 }
 0x157   : > { %v667_v56 = vcombine.low %v639_v51, %v646_v52  ;;  %v1891_v57 = vcombine.high %v639_v51, %v646_v52  ;;  %v683_v58 = vcombine.low %v655_v53, %v662_v54  ;;  %v1892_v59 = vcombine.high %v655_v53, %v662_v54 }
 0x158   : > { %v981_v62 = vpop.permute.xlu1 %980  ;;  %v991_v11 = vrot.slane %v983_v60, %v2287_v35  ;;  %v998_v12 = vrot.slane %v984_v61, %v2287_v35 }
 0x159   : > { %v674_v63 = vrot.slane %v667_v56, %v2287_v35  ;;  %v682_v0 = vrot.slane %v1891_v57, %v2287_v35  ;;  %v690_v2 = vrot.slane %v683_v58, %v2287_v35  ;;  %v698_v4 = vrot.slane %v1892_v59, %v2287_v35 }
 0x15a   : > { %v999_v5 = vcombine.low %v975_v50, %v981_v62  ;;  %v1000_v6 = vcombine.high %v975_v50, %v981_v62 }
 0x15b   : > { %v699_v7 = vcombine.low %v674_v63, %v682_v0  ;;  %v700_v8 = vcombine.high %v674_v63, %v682_v0  ;;  %v715_v9 = vcombine.low %v690_v2, %v698_v4  ;;  %v716_v10 = vcombine.high %v690_v2, %v698_v4 }
 0x15c   : > { %v1007_v13 = vrot.slane %v999_v5, %v2287_v35  ;;  %v1014_v14 = vrot.slane %v1000_v6, %v2287_v35 }
 0x15d   : > { %v707_v15 = vrot.slane %v699_v7, %v2289_v41  ;;  %v714_v16 = vrot.slane %v700_v8, %v2289_v41  ;;  %v723_v17 = vrot.slane %v715_v9, %v2289_v41  ;;  %v730_v18 = vrot.slane %v716_v10, %v2289_v41  ;;  %v583_v7 = vpop.f32.mrf.mxu1 }
 0x15e   : > { %v1015_v19 = vcombine.low %v991_v11, %v1007_v13  ;;  %v1016_v20 = vcombine.high %v991_v11, %v1007_v13  ;;  %v1031_v21 = vcombine.low %v998_v12, %v1014_v14  ;;  %v1032_v22 = vcombine.high %v998_v12, %v1014_v14 }
 0x15f   : > { %v731_v23 = vcombine.low %v707_v15, %v723_v17  ;;  %v732_v24 = vcombine.high %v707_v15, %v723_v17  ;;  %v733_v25 = vcombine.low %v714_v16, %v730_v18  ;;  %v734_v26 = vcombine.high %v714_v16, %v730_v18  ;;  %v1965_v8 = vpop.f32.mrf.mxu1 }
 0x160   : > { %v1023_v27 = vrot.slane %v1015_v19, %v2289_v41  ;;  %v1030_v28 = vrot.slane %v1016_v20, %v2289_v41  ;;  %v1039_v29 = vrot.slane %v1031_v21, %v2289_v41  ;;  %v1046_v30 = vrot.slane %v1032_v22, %v2289_v41 }
 0x161   : > { %v735_v31 = vpack.c.bf16 %v731_v23, %v731_v23  ;;  %v736_v32 = vpack.c.bf16 %v732_v24, %v732_v24  ;;  %v737_v33 = vpack.c.bf16 %v733_v25, %v733_v25  ;;  %v738_v34 = vpack.c.bf16 %v734_v26, %v734_v26  ;;  %v586_v9 = vpop.f32.mrf.mxu1 }
 0x162   : > { %v1051_v36 = vcombine.low %v1023_v27, %v1030_v28  ;;  %v1899_v37 = vcombine.high %v1023_v27, %v1030_v28  ;;  %v1067_v38 = vcombine.low %v1039_v29, %v1046_v30  ;;  %v1900_v39 = vcombine.high %v1039_v29, %v1046_v30  ;;  %v1887_v29 = vld [vmem:[%s2478_s7] ss:$0 sm:$0xff] }
 0x163   : > { %740 = vst.msk [vmem:[#allocation2] sm:$0xf] %vm739_vm2, %v735_v31  ;;  %741 = vst.msk [vmem:[#allocation2 + $0x4] sm:$0xf] %vm739_vm2, %v736_v32  ;;  %v1966_v10 = vpop.f32.mrf.mxu1  ;;  %v584_v32 = vadd.f32 %v1887_v29, %v583_v7 }
 0x164   : > { %742 = vst.msk [vmem:[#allocation2 + $0x8] sm:$0xf] %vm739_vm2, %v737_v33  ;;  %743 = vst.msk [vmem:[#allocation2 + $0xc] sm:$0xf] %vm739_vm2, %v738_v34  ;;  %v1058_v40 = vrot.slane %v1051_v36, %v2287_v35  ;;  %v1066_v42 = vrot.slane %v1899_v37, %v2287_v35  ;;  %v1074_v43 = vrot.slane %v1067_v38, %v2287_v35 }
 0x165   : > { %v1082_v44 = vrot.slane %v1900_v39, %v2287_v35 }
 0x166   : > { %v1083_v45 = vcombine.low %v1058_v40, %v1066_v42  ;;  %v1084_v53 = vcombine.high %v1058_v40, %v1066_v42 }
 0x167   : > { %v1099_v46 = vcombine.low %v1074_v43, %v1082_v44  ;;  %v1100_v54 = vcombine.high %v1074_v43, %v1082_v44 }
 0x168   : > { %v1091_v47 = vrot.slane %v1083_v45, %v2289_v41  ;;  %v1098_v61 = vrot.slane %v1084_v53, %v2289_v41 }
 0x169   : > { %v1107_v48 = vrot.slane %v1099_v46, %v2289_v41  ;;  %v1114_v62 = vrot.slane %v1100_v54, %v2289_v41 }
 0x16a   : > { %v1123_v49 = vld [vmem:[#allocation2] sm:$0xf]  ;;  %v1124_v50 = vld [vmem:[#allocation2 + $0x4] sm:$0xf] }
 0x16b   : > { %v1132_v51 = vsel %vm1127_vm3, %v1123_v49, 0  ;;  %v1178_v52 = vsel %vm1127_vm3, %v1124_v50, 0  ;;  %v1115_v55 = vcombine.low %v1091_v47, %v1107_v48  ;;  %v1116_v56 = vcombine.high %v1091_v47, %v1107_v48  ;;  %v1125_v57 = vld [vmem:[#allocation2 + $0x8] sm:$0xf]  ;;  %v1126_v58 = vld [vmem:[#allocation2 + $0xc] sm:$0xf] }
 0x16c   : > { %1976 = vmatpush3.bf16.xpose.msra.mxu1 %v1132_v51  ;;  %1982 = vmatpush3.bf16.xpose.msra.mxu0 %v1178_v52  ;;  %v1224_v63 = vsel %vm1127_vm3, %v1125_v57, 0  ;;  %v1270_v0 = vsel %vm1127_vm3, %v1126_v58, 0  ;;  %v1117_v2 = vcombine.low %v1098_v61, %v1114_v62  ;;  %v1118_v4 = vcombine.high %v1098_v61, %v1114_v62 }
 0x16d   : > { %1987 = vmatprep.subr.bf16.mxu1 %v2126_v1  ;;  %1993 = vmatprep.subr.bf16.mxu0 %v2126_v1  ;;  %v1119_v59 = vpack.c.bf16 %v1115_v55, %v1115_v55  ;;  %v1120_v60 = vpack.c.bf16 %v1116_v56, %v1116_v56 }
 0x16e   : > { %v1121_v5 = vpack.c.bf16 %v1117_v2, %v1117_v2  ;;  %v1122_v6 = vpack.c.bf16 %v1118_v4, %v1118_v4 }
 0x173   : > { %1978 = vmatmul.mubr.msk.bf16.vlgmr.msra.gmra.mxu1 %vm1127_vm3, %v1119_v59  ;;  %1984 = vmatmul.mubr.msk.bf16.vlgmr.msra.gmra.mxu0 %vm1127_vm3, %v1120_v60 }
 0x174   : > { %1988 = vmatpush3.bf16.xpose.msra.mxu1 %v1224_v63  ;;  %1994 = vmatpush3.bf16.xpose.msra.mxu0 %v1270_v0 }
 0x175   : > { %1989 = vmatprep.mubr.msk.bf16.mxu1 %vm2127_vm0, %v2126_v1  ;;  %1995 = vmatprep.mubr.msk.bf16.mxu0 %vm2127_vm0, %v2126_v1 }
 0x176   : > { %1999 = vmatprep.subr.bf16.mxu1 %v2126_v1  ;;  %2005 = vmatprep.subr.bf16.mxu0 %v2126_v1 }
 0x17b   : > { %1990 = vmatmul.mubr.msk.bf16.vlgmr.msra.gmra.mxu1 %vm1127_vm3, %v1121_v5  ;;  %1996 = vmatmul.mubr.msk.bf16.vlgmr.msra.gmra.mxu0 %vm1127_vm3, %v1122_v6 }
 0x17c   : > { %2001 = vmatprep.mubr.msk.bf16.mxu1 %vm2127_vm0, %v2126_v1  ;;  %2007 = vmatprep.mubr.msk.bf16.mxu0 %vm2127_vm0, %v2126_v1 }
 0x233   : > { %v1168_v11 = vpop.f32.mrf.mxu1  ;;  %v1214_v12 = vpop.f32.mrf.mxu0 }
 0x234   : > { %v1312_v13 = vsel %vm1127_vm3, %v1168_v11, -inf  ;;  %v1315_v14 = vsel %vm1127_vm3, %v1214_v12, -inf }
 0x235   : > { %1313 = vmax.xlane.f32.xlu0 %v1312_v13  ;;  %v1979_v15 = vpop.f32.mrf.mxu1  ;;  %1316 = vmax.xlane.f32.xlu1 %v1315_v14  ;;  %v1985_v16 = vpop.f32.mrf.mxu0 }
 0x237   : > { %v1171_v17 = vpop.f32.mrf.mxu1  ;;  %v1217_v18 = vpop.f32.mrf.mxu0 }
 0x239   : > { %v1980_v19 = vpop.f32.mrf.mxu1  ;;  %v1986_v20 = vpop.f32.mrf.mxu0 }
 0x23b   : > { %v1260_v21 = vpop.f32.mrf.mxu1  ;;  %v1306_v22 = vpop.f32.mrf.mxu0 }
 0x23c   : > { %v1318_v23 = vsel %vm1127_vm3, %v1260_v21, -inf  ;;  %v1321_v28 = vsel %vm1127_vm3, %v1306_v22, -inf }
 0x23d   : > { %1319 = vmax.xlane.f32.xlu0 %v1318_v23  ;;  %v1991_v24 = vpop.f32.mrf.mxu1  ;;  %v1997_v25 = vpop.f32.mrf.mxu0 }
 0x23f   : > { %v1263_v26 = vpop.f32.mrf.mxu1  ;;  %v1309_v27 = vpop.f32.mrf.mxu0 }
 0x241   : > { %v1992_v30 = vpop.f32.mrf.mxu1  ;;  %1322 = vmax.xlane.f32.xlu0 %v1321_v28  ;;  %v1998_v31 = vpop.f32.mrf.mxu0 }
 0x246   : > { %745 = vrot.lane.b32.xlu1 %v584_v32, %s2129_s28 }
 0x24a   : > { %751 = vrot.lane.b32.xlu1 %v584_v32, %s2128_s27 }
 0x257   : > { %748 = vrot.lane.b32.xlu0 %v584_v32, %s2130_s14 }
 0x2be   : > { %v1314_v33 = vpop.xlane.xlu0 %1313  ;;  %v1317_v34 = vpop.xlane.xlu1 %1316 }
 0x2bf   : > { %v1324_v36 = vsub.f32 %v1168_v11, %v1314_v33  ;;  %v1325_v37 = vsub.f32 %v1214_v12, %v1317_v34 }
 0x2c1   : > { %v1328_v38 = vmul.f32 1.442695, %v1324_v36  ;;  %v1330_v39 = vmul.f32 1.442695, %v1325_v37 }
 0x2c2   : > { %v746_v40 = vpop.permute.xlu1 %745 }
 0x2c3   : > { %2084 = vpow2.f32 %v1328_v38 }
 0x2c4   : > { %2086 = vpow2.f32 %v1330_v39 }
 0x2c6   : > { %v1320_v42 = vpop.xlane.xlu0 %1319  ;;  %v752_v45 = vpop.permute.xlu1 %751 }
 0x2c7   : > { %v1326_v43 = vsub.f32 %v1260_v21, %v1320_v42  ;;  %v770_v48 = vcombine.low %v746_v40, %v752_v45  ;;  %v771_v49 = vcombine.high %v746_v40, %v752_v45 }
 0x2c9   : > { %v1332_v44 = vmul.f32 1.442695, %v1326_v43  ;;  %v778_v55 = vrot.slane %v770_v48, %v2287_v35  ;;  %v785_v57 = vrot.slane %v771_v49, %v2287_v35 }
 0x2ca   : > { %v1323_v46 = vpop.xlane.xlu0 %1322 }
 0x2cb   : > { %2088 = vpow2.f32 %v1332_v44  ;;  %v1327_v47 = vsub.f32 %v1306_v22, %v1323_v46 }
 0x2cd   : > { %v1334_v50 = vmul.f32 1.442695, %v1327_v47 }
 0x2ce   : > { %v749_v51 = vpop.permute.xlu0 %748 }
 0x2cf   : > { %2090 = vpow2.f32 %v1334_v50  ;;  %v754_v52 = vcombine.low %v584_v32, %v749_v51  ;;  %v755_v53 = vcombine.high %v584_v32, %v749_v51 }
 0x2d0   : > { %v2359_v54 = vpop.eup %2084 }
 0x2d1   : > { %v2362_v56 = vpop.eup %2086  ;;  %v762_v58 = vrot.slane %v754_v52, %v2287_v35  ;;  %v769_v59 = vrot.slane %v755_v53, %v2287_v35  ;;  %v1336_v60 = vsel %vm1127_vm3, %v2359_v54, 0.0 }
 0x2d2   : > { %1337 = vadd.xlane.f32.xlu1 %v1336_v60  ;;  %v1339_v61 = vsel %vm1127_vm3, %v2362_v56, 0.0 }
 0x2d3   : > { %v786_v62 = vcombine.low %v762_v58, %v778_v55  ;;  %v787_v63 = vcombine.high %v762_v58, %v778_v55  ;;  %v802_v0 = vcombine.low %v769_v59, %v785_v57  ;;  %v803_v2 = vcombine.high %v769_v59, %v785_v57  ;;  %1340 = vadd.xlane.f32.xlu0 %v1339_v61  ;;  %v1553_v55 = vld [vmem:[%s2479_s8] sm:$0xf] }
 0x2d4   : > { %v1561_v58 = vsel %vm1367_vm4, %v1553_v55, 0 }
 0x2d5   : > { %v794_v4 = vrot.slane %v786_v62, %v2289_v41  ;;  %v801_v5 = vrot.slane %v787_v63, %v2289_v41  ;;  %v810_v6 = vrot.slane %v802_v0, %v2289_v41  ;;  %v817_v7 = vrot.slane %v803_v2, %v2289_v41  ;;  %v1554_v62 = vld [vmem:[%s2479_s8 + $0x4] sm:$0xf]  ;;  %v1555_v0 = vld [vmem:[%s2479_s8 + $0x8] sm:$0xf]  ;;  %v1556_v2 = vld [vmem:[%s2479_s8 + $0xc] sm:$0xf] }
 0x2d6   : > { %v1607_v63 = vsel %vm1367_vm4, %v1554_v62, 0  ;;  %v1915_v62 = vld [vmem:[%s2482_s11] ss:$0 sm:$0xff] }
 0x2d7   : > { %v822_v8 = vcombine.low %v794_v4, %v801_v5  ;;  %v1893_v9 = vcombine.high %v794_v4, %v801_v5  ;;  %v838_v10 = vcombine.low %v810_v6, %v817_v7  ;;  %v1894_v11 = vcombine.high %v810_v6, %v817_v7 }
 0x2d8   : > { %v2375_v12 = vpop.eup %2088  ;;  %v1653_v7 = vsel %vm1367_vm4, %v1555_v0, 0 }
 0x2d9   : > { %v829_v13 = vrot.slane %v822_v8, %v2287_v35  ;;  %v837_v14 = vrot.slane %v1893_v9, %v2287_v35  ;;  %v845_v15 = vrot.slane %v838_v10, %v2287_v35  ;;  %v853_v16 = vrot.slane %v1894_v11, %v2287_v35 }
 0x2da   : > { %v1342_v17 = vsel %vm1127_vm3, %v2375_v12, 0.0  ;;  %v1699_v10 = vsel %vm1367_vm4, %v1556_v2, 0 }
 0x2db   : > { %v854_v18 = vcombine.low %v829_v13, %v837_v14  ;;  %v855_v19 = vcombine.high %v829_v13, %v837_v14  ;;  %v870_v20 = vcombine.low %v845_v15, %v853_v16  ;;  %v871_v21 = vcombine.high %v845_v15, %v853_v16  ;;  %1343 = vadd.xlane.f32.xlu0 %v1342_v17 }
 0x2dc   : > { %v2091_v22 = vpop.eup %2090 }
 0x2dd   : > { %v862_v23 = vrot.slane %v854_v18, %v2289_v41  ;;  %v869_v24 = vrot.slane %v855_v19, %v2289_v41  ;;  %v878_v25 = vrot.slane %v870_v20, %v2289_v41  ;;  %v885_v26 = vrot.slane %v871_v21, %v2289_v41 }
 0x2de   : > { %v1345_v27 = vsel %vm1127_vm3, %v2091_v22, 0.0 }
 0x2df   : > { %v886_v35 = vcombine.low %v862_v23, %v878_v25  ;;  %v887_v28 = vcombine.high %v862_v23, %v878_v25  ;;  %v888_v29 = vcombine.low %v869_v24, %v885_v26  ;;  %v889_v30 = vcombine.high %v869_v24, %v885_v26  ;;  %1346 = vadd.xlane.f32.xlu1 %v1345_v27 }
 0x2e1   : > { %v890_v31 = vpack.c.bf16 %v886_v35, %v886_v35  ;;  %v891_v32 = vpack.c.bf16 %v887_v28, %v887_v28  ;;  %v892_v33 = vpack.c.bf16 %v888_v29, %v888_v29  ;;  %v893_v34 = vpack.c.bf16 %v889_v30, %v889_v30 }
 0x2e3   : > { %894 = vst.msk [vmem:[#allocation3] sm:$0xf] %vm739_vm2, %v890_v31  ;;  %895 = vst.msk [vmem:[#allocation3 + $0x4] sm:$0xf] %vm739_vm2, %v891_v32 }
 0x2e4   : > { %896 = vst.msk [vmem:[#allocation3 + $0x8] sm:$0xf] %vm739_vm2, %v892_v33  ;;  %897 = vst.msk [vmem:[#allocation3 + $0xc] sm:$0xf] %vm739_vm2, %v893_v34 }
 0x2ea   : > { %v1360_v41 = vld [vmem:[#allocation3] sm:$0xf]  ;;  %v1361_v36 = vld [vmem:[#allocation3 + $0x4] sm:$0xf] }
 0x2eb   : > { %v1369_v37 = vsel %vm1367_vm4, %v1360_v41, 0  ;;  %v1415_v38 = vsel %vm1367_vm4, %v1361_v36, 0  ;;  %v1362_v48 = vld [vmem:[#allocation3 + $0x8] sm:$0xf]  ;;  %v1363_v50 = vld [vmem:[#allocation3 + $0xc] sm:$0xf] }
 0x2ec   : > { %2000 = vmatpush3.bf16.msra.mxu1 %v1369_v37  ;;  %2006 = vmatpush3.bf16.msra.mxu0 %v1415_v38  ;;  %v1461_v52 = vsel %vm1367_vm4, %v1362_v48, 0  ;;  %v1507_v53 = vsel %vm1367_vm4, %v1363_v50, 0 }
 0x2ed   : > { %2011 = vmatprep.subr.bf16.mxu1 %v2126_v1  ;;  %2017 = vmatprep.subr.bf16.mxu0 %v2126_v1 }
 0x35b   : > { %v1338_v39 = vpop.xlane.xlu1 %1337 }
 0x35c   : > { %2092 = vrcp.f32 %v1338_v39  ;;  %v1341_v40 = vpop.xlane.xlu0 %1340 }
 0x35d   : > { %2094 = vrcp.f32 %v1341_v40 }
 0x364   : > { %v1344_v42 = vpop.xlane.xlu0 %1343 }
 0x365   : > { %2096 = vrcp.f32 %v1344_v42 }
 0x368   : > { %v1347_v43 = vpop.xlane.xlu1 %1346 }
 0x369   : > { %v2093_v44 = vpop.eup %2092  ;;  %2098 = vrcp.f32 %v1347_v43  ;;  %v1913_v43 = vld [vmem:[%s2480_s9] ss:$0 sm:$0xff] }
 0x36a   : > { %v2095_v45 = vpop.eup %2094  ;;  %v1352_v46 = vmul.f32 %v2093_v44, %v2359_v54 }
 0x36b   : > { %v1353_v47 = vmul.f32 %v2095_v45, %v2362_v56 }
 0x36c   : > { %v1356_v49 = vpack.c.bf16 %v1352_v46, %v1352_v46 }
 0x36d   : > { %v1357_v51 = vpack.c.bf16 %v1353_v47, %v1353_v47 }
 0x36e   : > { %2002 = vmatmul.mubr.msk.bf16.vlgmr.msra.gmra.mxu1 %vm1127_vm3, %v1356_v49 }
 0x36f   : > { %2008 = vmatmul.mubr.msk.bf16.vlgmr.msra.gmra.mxu0 %vm1127_vm3, %v1357_v51  ;;  %2012 = vmatpush3.bf16.msra.mxu1 %v1461_v52 }
 0x370   : > { %2018 = vmatpush3.bf16.msra.mxu0 %v1507_v53  ;;  %2013 = vmatprep.mubr.msk.bf16.mxu1 %vm2127_vm0, %v2126_v1 }
 0x371   : > { %2019 = vmatprep.mubr.msk.bf16.mxu0 %vm2127_vm0, %v2126_v1  ;;  %2023 = vmatprep.subr.bf16.mxu1 %v2126_v1 }
 0x372   : > { %v2097_v54 = vpop.eup %2096  ;;  %2029 = vmatprep.subr.bf16.mxu0 %v2126_v1 }
 0x373   : > { %v1354_v56 = vmul.f32 %v2097_v54, %v2375_v12 }
 0x375   : > { %v1358_v57 = vpack.c.bf16 %v1354_v56, %v1354_v56 }
 0x376   : > { %v2099_v59 = vpop.eup %2098 }
 0x377   : > { %2014 = vmatmul.mubr.msk.bf16.vlgmr.msra.gmra.mxu1 %vm1127_vm3, %v1358_v57  ;;  %v1355_v60 = vmul.f32 %v2099_v59, %v2091_v22 }
 0x378   : > { %2024 = vmatpush3.bf16.msra.mxu1 %v1561_v58  ;;  %2025 = vmatprep.mubr.msk.bf16.mxu1 %vm2127_vm0, %v2126_v1 }
 0x379   : > { %v1359_v61 = vpack.c.bf16 %v1355_v60, %v1355_v60  ;;  %2035 = vmatprep.subr.bf16.mxu1 %v2126_v1 }
 0x37b   : > { %2020 = vmatmul.mubr.msk.bf16.vlgmr.msra.gmra.mxu0 %vm1127_vm3, %v1359_v61 }
 0x37c   : > { %2031 = vmatprep.mubr.msk.bf16.mxu0 %vm2127_vm0, %v2126_v1  ;;  %2030 = vmatpush3.bf16.msra.mxu0 %v1607_v63 }
 0x37d   : > { %2041 = vmatprep.subr.bf16.mxu0 %v2126_v1 }
 0x42e   : > { %v1405_v4 = vpop.f32.mrf.mxu1 }
 0x42f   : > { %v1549_v5 = vpack.c.bf16 %v1405_v4, %v1405_v4  ;;  %v1451_v6 = vpop.f32.mrf.mxu0 }
 0x430   : > { %v1550_v8 = vpack.c.bf16 %v1451_v6, %v1451_v6  ;;  %v2003_v9 = vpop.f32.mrf.mxu1 }
 0x431   : > { %v2009_v11 = vpop.f32.mrf.mxu0  ;;  %2026 = vmatmul.mubr.msk.bf16.vlgmr.msra.gmra.mxu1 %vm1127_vm3, %v1549_v5 }
 0x432   : > { %2032 = vmatmul.mubr.msk.bf16.vlgmr.msra.gmra.mxu0 %vm1127_vm3, %v1550_v8  ;;  %v1408_v12 = vpop.f32.mrf.mxu1  ;;  %2036 = vmatpush3.bf16.msra.mxu1 %v1653_v7 }
 0x433   : > { %v1454_v13 = vpop.f32.mrf.mxu0  ;;  %2042 = vmatpush3.bf16.msra.mxu0 %v1699_v10  ;;  %2037 = vmatprep.mubr.msk.bf16.mxu1 %vm2127_vm0, %v2126_v1 }
 0x434   : > { %v2004_v14 = vpop.f32.mrf.mxu1  ;;  %2043 = vmatprep.mubr.msk.bf16.mxu0 %vm2127_vm0, %v2126_v1 }
 0x435   : > { %v2010_v15 = vpop.f32.mrf.mxu0 }
 0x437   : > { %v1497_v16 = vpop.f32.mrf.mxu1 }
 0x438   : > { %v1551_v17 = vpack.c.bf16 %v1497_v16, %v1497_v16 }
 0x439   : > { %v2015_v18 = vpop.f32.mrf.mxu1 }
 0x43a   : > { %2038 = vmatmul.mubr.msk.bf16.vlgmr.msra.gmra.mxu1 %vm1127_vm3, %v1551_v17 }
 0x43b   : > { %v1500_v19 = vpop.f32.mrf.mxu1  ;;  %v1543_v20 = vpop.f32.mrf.mxu0 }
 0x43c   : > { %v1552_v21 = vpack.c.bf16 %v1543_v20, %v1543_v20 }
 0x43d   : > { %v2016_v22 = vpop.f32.mrf.mxu1  ;;  %v2021_v23 = vpop.f32.mrf.mxu0 }
 0x43e   : > { %2044 = vmatmul.mubr.msk.bf16.vlgmr.msra.gmra.mxu0 %vm1127_vm3, %v1552_v21 }
 0x43f   : > { %v1546_v24 = vpop.f32.mrf.mxu0 }
 0x441   : > { %v2022_v25 = vpop.f32.mrf.mxu0 }
 0x4f1   : > { %v1597_v26 = vpop.f32.mrf.mxu1 }
 0x4f2   : > { %v1643_v27 = vpop.f32.mrf.mxu0  ;;  %v1741_v32 = vsel %vm478_vm1, %v1597_v26, 0.0 }
 0x4f3   : > { %v2027_v35 = vpop.f32.mrf.mxu1  ;;  %v1742_v33 = vsel %vm478_vm1, %v1643_v27, 0.0 }
 0x4f4   : > { %v2033_v28 = vpop.f32.mrf.mxu0  ;;  %v1743_v36 = vadd.f32 %v1742_v33, %v1741_v32 }
 0x4f5   : > { %v1600_v1 = vpop.f32.mrf.mxu1 }
 0x4f6   : > { %v1646_v29 = vpop.f32.mrf.mxu0 }
 0x4f7   : > { %v2028_v30 = vpop.f32.mrf.mxu1 }
 0x4f8   : > { %v2034_v31 = vpop.f32.mrf.mxu0 }
 0x4fa   : > { %v1689_v34 = vpop.f32.mrf.mxu1 }
 0x4fb   : > { %v1744_v41 = vsel %vm478_vm1, %v1689_v34, 0.0 }
 0x4fc   : > { %v2039_v37 = vpop.f32.mrf.mxu1  ;;  %v1745_v38 = vadd.f32 %v1744_v41, %v1743_v36 }
 0x4fe   : > { %v1692_v39 = vpop.f32.mrf.mxu1  ;;  %v1735_v40 = vpop.f32.mrf.mxu0 }
 0x4ff   : > { %v1746_v42 = vsel %vm478_vm1, %v1735_v40, 0.0 }
 0x500   : > { %v1747_v44 = vadd.f32 %v1746_v42, %v1745_v38  ;;  %v2040_v45 = vpop.f32.mrf.mxu1  ;;  %v2045_v46 = vpop.f32.mrf.mxu0 }
 0x502   : > { %v1755_v47 = vadd.f32 %v1913_v43, %v1747_v44  ;;  %v1738_v48 = vpop.f32.mrf.mxu0 }
 0x504   : > { %v2046_v49 = vpop.f32.mrf.mxu0  ;;  %v1756_v50 = vadd.f32 %v1755_v47, %v2240_v3  ;;  %v1914_v3 = vld [vmem:[%s2481_s10] ss:$0 sm:$0xff] }
 0x506   : > { %v1757_v51 = vsel %vm478_vm1, %v1756_v50, 0.0 }
 0x507   : > { %1758 = vadd.xlane.f32.xlu0 %v1757_v51 }
 0x590   : > { %v1759_v52 = vpop.xlane.xlu0 %1758 }
 0x591   : > { %v1761_v53 = vmul.f32 0.03125, %v1759_v52 }
 0x593   : > { %v1762_v54 = vsub.f32 %v1756_v50, %v1761_v53 }
 0x595   : > { %v1763_v55 = vmul.f32 %v1762_v54, %v1762_v54 }
 0x597   : > { %v1764_v56 = vsel %vm478_vm1, %v1763_v55, 0.0 }
 0x598   : > { %1765 = vadd.xlane.f32.xlu1 %v1764_v56 }
 0x621   : > { %v1766_v57 = vpop.xlane.xlu1 %1765 }
 0x622   : > { %v1767_v58 = vmul.f32 0.03125, %v1766_v57 }
 0x624   : > { %v1768_v59 = vadd.f32 1e-05, %v1767_v58 }
 0x626   : > { %2100 = vrsqrt.f32 %v1768_v59 }
 0x633   : > { %v2101_v60 = vpop.eup %2100 }
 0x634   : > { %v1770_v61 = vmul.f32 %v2101_v60, %v1762_v54 }
 0x636   : > { %v1778_v63 = vmul.f32 %v1914_v3, %v1770_v61 }
 0x638   : > { %v1786_v0 = vadd.f32 %v1915_v62, %v1778_v63 }
 0x63a   : > { %1787 = vst.msk [vmem:[%s445_s26] sm:$0xff] %vm478_vm1, %v1786_v0 }
 0x63b PF: > { %s22_s23 = sadd.s32 1, %s2124_s23   ;;  %s2484_s21 = smov %s2120_s22 }
 0x63c   : > { %p19_p5 = scmp.ge.s32.totalorder %s22_s23, 4   ;;  %s2485_s22 = smov %s2487_s24 }
 0x63e   :  { %21 = sbr.rel (!%p19_p5) target bundleno = 2 (0x2), region = 107 }

</bundles_post_ra>
